<compile_context>
chip_gen: v5e
topology: v5e:2x2
jax: 0.10.0
libtpu: 0.0.40
codegen_flags: <defaults>
</compile_context>

<pallas_src>
import math

import jax
import jax.numpy as jnp
from jax import lax
from jax.experimental import pallas as pl
from jax.experimental.pallas import tpu as pltpu

NUM_TERMS = 10
_INV_FACT = tuple(1.0 / float(math.factorial(i)) for i in range(NUM_TERMS + 1))

_MXU_CHUNK = 8       # matrix pairs per inner-loop iteration (vreg-pressure cap)
_TARGET_BLOCK = 64   # max matrix pairs per grid step (DMA block size)


def _bmm(x, y):
    return jnp.einsum('bij,bjk->bik', x, y, preferred_element_type=jnp.float32)


def _zoh_chunk(dt, coefs, A, B, n):
    """ZOH Taylor series for one (chunk, n, n)/(chunk, n, m) sub-block.

    Squaring schedule (P2 = P1^2, P4 = P2^2, P8 = P4^2 plus cross products)
    cuts the serial matmul dependency depth to ~4 while keeping ~10 matmuls.
    The whole B-series is folded into a single M @ B matmul.
    """
    eye = jnp.eye(n, dtype=jnp.float32)
    P1 = A * dt
    A_acc = eye + P1                                # i = 1 term (1/1! = 1)
    M_acc = coefs[1] * P1                           # B-series accumulator

    P2 = _bmm(P1, P1)
    A_acc = A_acc + P2 * _INV_FACT[2]; M_acc = M_acc + coefs[2] * P2
    P3 = _bmm(P2, P1)
    A_acc = A_acc + P3 * _INV_FACT[3]; M_acc = M_acc + coefs[3] * P3
    P4 = _bmm(P2, P2)
    A_acc = A_acc + P4 * _INV_FACT[4]; M_acc = M_acc + coefs[4] * P4
    P5 = _bmm(P4, P1)
    A_acc = A_acc + P5 * _INV_FACT[5]; M_acc = M_acc + coefs[5] * P5
    P6 = _bmm(P4, P2)
    A_acc = A_acc + P6 * _INV_FACT[6]; M_acc = M_acc + coefs[6] * P6
    P7 = _bmm(P4, P3)
    A_acc = A_acc + P7 * _INV_FACT[7]; M_acc = M_acc + coefs[7] * P7
    P8 = _bmm(P4, P4)
    A_acc = A_acc + P8 * _INV_FACT[8]; M_acc = M_acc + coefs[8] * P8
    P9 = _bmm(P8, P1)
    A_acc = A_acc + P9 * _INV_FACT[9]; M_acc = M_acc + coefs[9] * P9
    P10 = _bmm(P8, P2)
    A_acc = A_acc + P10 * _INV_FACT[10]             # no B-series term for i=10

    B_disc = dt * B + _bmm(M_acc, B)                # one (n,n)@(n,m) for the B-series
    return A_acc, B_disc


def _make_zoh_kernel(chunk, n, m):
    def kernel(coef_ref, a_ref, b_ref, ad_ref, bd_ref):
        # coef_ref: SMEM (NUM_TERMS,) f32; coef[0] = dt, coef[i] = dt^{i+1}/10!
        dt = coef_ref[0]
        # Hoist all scalar SMEM reads out of the inner loop.
        coefs = [coef_ref[i] for i in range(NUM_TERMS)]
        bb = a_ref.shape[0]
        n_chunks = bb // chunk

        if n_chunks == 1:
            Ad, Bd = _zoh_chunk(dt, coefs, a_ref[...], b_ref[...], n)
            ad_ref[...] = Ad.astype(ad_ref.dtype)
            bd_ref[...] = Bd.astype(bd_ref.dtype)
        else:
            def body(c, carry):
                off = pl.multiple_of(c * chunk, chunk)
                A = a_ref[pl.ds(off, chunk)]
                Bm = b_ref[pl.ds(off, chunk)]
                Ad, Bd = _zoh_chunk(dt, coefs, A, Bm, n)
                ad_ref[pl.ds(off, chunk)] = Ad.astype(ad_ref.dtype)
                bd_ref[pl.ds(off, chunk)] = Bd.astype(bd_ref.dtype)
                return carry

            lax.fori_loop(0, n_chunks, body, 0)

    return kernel


def _chip_kind():
    try:
        return jax.devices()[0].device_kind.lower()
    except Exception:
        return ""


def _choose_block(batch, multi_core):
    """Pairs per grid step (DMA block) and pairs per inner MXU chunk."""
    bb = min(batch, _TARGET_BLOCK)
    if multi_core and batch >= 2:
        # keep >= 2 grid steps only on 2-TensorCore chips (megacore sharding)
        bb = min(bb, pl.cdiv(batch, 2))
    bb = max(bb, 1)
    chunk = min(_MXU_CHUNK, bb)
    bb = max(chunk, (bb // chunk) * chunk)          # bb must be a multiple of chunk
    return bb, chunk


def _pad128(x):
    return ((x + 127) // 128) * 128


def _vmem_budget_bytes(bb, chunk, n, m, is_v7x):
    # Double-buffered in + out blocks, counted with the lane-padded footprint.
    io = 2 * 2 * bb * n * (_pad128(n) + _pad128(m)) * 4
    # In-kernel live temporaries (powers + accumulators), lane-padded.
    work = 12 * chunk * n * _pad128(n) * 4
    need = io + work + (8 << 20)
    cap = (56 << 20) if is_v7x else (100 << 20)     # v7x: only 64 MiB physical VMEM
    return int(min(max(need, 32 << 20), cap))


def discretization_layer_zoh(A, B, dt):
    """A: (batch, n, n) f32, B: (batch, n, m) f32, dt: scalar f32."""
    batch, n, _ = A.shape
    m = B.shape[-1]

    # Coefficients computed in the wrapper (mirrors the reference's sequential
    # dt-power chain and the fixed 10! denominator in the B-series).
    dt = jnp.asarray(dt, dtype=jnp.float32)
    fact_last = float(math.factorial(NUM_TERMS))
    coefs = [dt]
    dt_power = dt
    for _ in range(1, NUM_TERMS):
        dt_power = dt_power * dt
        coefs.append(dt_power / fact_last)
    coef_arr = jnp.stack(coefs).astype(jnp.float32)        # (NUM_TERMS,)

    kind = _chip_kind()
    multi_core = any(t in kind for t in ("v7", "v4", "v5p"))
    is_v7x = "v7" in kind

    bb, chunk = _choose_block(batch, multi_core)

    # Pad batch to a multiple of bb (padded rows are zeros -> A_disc = I,
    # B_disc = 0; sliced off below). No divisor search needed.
    pad = (-batch) % bb
    if pad:
        A = jnp.concatenate([A, jnp.zeros((pad, n, n), A.dtype)], axis=0)
        B = jnp.concatenate([B, jnp.zeros((pad, n, m), B.dtype)], axis=0)
    padded = batch + pad
    grid = (padded // bb,)

    kernel = _make_zoh_kernel(chunk, n, m)

    grid_spec = pltpu.PrefetchScalarGridSpec(
        num_scalar_prefetch=0,
        grid=grid,
        in_specs=[
            pl.BlockSpec(memory_space=pltpu.SMEM),            # coefficient array
            pl.BlockSpec((bb, n, n), lambda b: (b, 0, 0)),    # A block
            pl.BlockSpec((bb, n, m), lambda b: (b, 0, 0)),    # B block
        ],
        out_specs=[
            pl.BlockSpec((bb, n, n), lambda b: (b, 0, 0)),
            pl.BlockSpec((bb, n, m), lambda b: (b, 0, 0)),
        ],
    )

    A_d, B_d = pl.pallas_call(
        kernel,
        out_shape=(
            jax.ShapeDtypeStruct((padded, n, n), jnp.float32),
            jax.ShapeDtypeStruct((padded, n, m), jnp.float32),
        ),
        grid_spec=grid_spec,
        compiler_params=pltpu.CompilerParams(
            dimension_semantics=("parallel",),
            vmem_limit_bytes=_vmem_budget_bytes(bb, chunk, n, m, is_v7x),
        ),
    )(coef_arr, A.astype(jnp.float32), B.astype(jnp.float32))

    if pad:
        A_d = A_d[:batch]
        B_d = B_d[:batch]
    return A_d, B_d


def _zoh_reference(A, B, dt):
    """Pure-JAX reference mirroring the PyTorch code (for correctness check)."""
    n = A.shape[-1]
    I = jnp.broadcast_to(jnp.eye(n, dtype=A.dtype), A.shape)
    At = A * dt
    At_power = I
    A_disc = I
    factorial = 1.0
    for i in range(1, NUM_TERMS + 1):
        factorial *= float(i)
        At_power = jnp.matmul(At_power, At)
        A_disc = A_disc + At_power / factorial
    B_disc = dt * B
    At_integral = I
    dt_power = dt
    for i in range(1, NUM_TERMS):
        dt_power = dt_power * dt
        At_integral = jnp.matmul(At_integral, At)
        B_disc = B_disc + dt_power / factorial * jnp.matmul(At_integral, B)
    return A_disc, B_disc


if __name__ == "__main__":
    # --- deterministic "module init" (dt_learnable=True, method='zoh') ---
    dt_init, dt_min, dt_max = 0.01, 1e-4, 0.1
    frac = (dt_init - dt_min) / (dt_max - dt_min)
    p = jnp.log(frac / (1.0 - frac)).astype(jnp.float32)   # logit
    dt = jax.nn.sigmoid(p) * (dt_max - dt_min) + dt_min    # dt property

    n, m = 32, 16
    key = jax.random.PRNGKey(0)

    ok = True
    # batch=2: module-sized case (single-chunk fast path);
    # batch=17: exercises batch padding + the inner fori_loop chunking.
    for batch in (2, 17):
        kA, kB = jax.random.split(jax.random.fold_in(key, batch))
        A = jax.random.normal(kA, (batch, n, n), dtype=jnp.float32)
        B = jax.random.normal(kB, (batch, n, m), dtype=jnp.float32)

        A_d, B_d = discretization_layer_zoh(A, B, dt)
        jax.block_until_ready((A_d, B_d))

        A_ref, B_ref = _zoh_reference(A, B, dt)
        ok = ok and bool(jnp.allclose(A_d, A_ref, atol=1e-5, rtol=1e-5))
        ok = ok and bool(jnp.allclose(B_d, B_ref, atol=1e-5, rtol=1e-5))

    assert ok, "mismatch vs reference"
    print("KERNEL_OK")
</pallas_src>

<mosaic_0001>
module attributes {stable_mosaic.version = 11 : i64} {
  func.func @kernel(%arg0: i32, %arg1: memref<10xf32, #tpu.memory_space<smem>>, %arg2: memref<2x32x32xf32, #tpu.memory_space<vmem>>, %arg3: memref<2x32x16xf32, #tpu.memory_space<vmem>>, %arg4: memref<2x32x32xf32, #tpu.memory_space<vmem>>, %arg5: memref<2x32x16xf32, #tpu.memory_space<vmem>>) attributes {dimension_semantics = [#tpu.dimension_semantics<parallel>], iteration_bounds = array<i64: 1>, scalar_prefetch = 0 : i64, scratch_operands = 0 : i64, tpu.core_type = #tpu.core_type<tc>, window_params = [{transform_indices = @transform_0, window_bounds = array<i64: 10>}, {transform_indices = @transform_1, window_bounds = array<i64: 2, 32, 32>}, {transform_indices = @transform_2, window_bounds = array<i64: 2, 32, 16>}, {transform_indices = @transform_3, window_bounds = array<i64: 2, 32, 32>}, {transform_indices = @transform_4, window_bounds = array<i64: 2, 32, 16>}]} {
    %c0 = arith.constant 0 : index
    %0 = memref.load %arg1[%c0] : memref<10xf32, #tpu.memory_space<smem>>
    %c1 = arith.constant 1 : index
    %1 = memref.load %arg1[%c1] : memref<10xf32, #tpu.memory_space<smem>>
    %c2 = arith.constant 2 : index
    %2 = memref.load %arg1[%c2] : memref<10xf32, #tpu.memory_space<smem>>
    %c3 = arith.constant 3 : index
    %3 = memref.load %arg1[%c3] : memref<10xf32, #tpu.memory_space<smem>>
    %c4 = arith.constant 4 : index
    %4 = memref.load %arg1[%c4] : memref<10xf32, #tpu.memory_space<smem>>
    %c5 = arith.constant 5 : index
    %5 = memref.load %arg1[%c5] : memref<10xf32, #tpu.memory_space<smem>>
    %c6 = arith.constant 6 : index
    %6 = memref.load %arg1[%c6] : memref<10xf32, #tpu.memory_space<smem>>
    %c7 = arith.constant 7 : index
    %7 = memref.load %arg1[%c7] : memref<10xf32, #tpu.memory_space<smem>>
    %c8 = arith.constant 8 : index
    %8 = memref.load %arg1[%c8] : memref<10xf32, #tpu.memory_space<smem>>
    %c9 = arith.constant 9 : index
    %9 = memref.load %arg1[%c9] : memref<10xf32, #tpu.memory_space<smem>>
    %c0_0 = arith.constant 0 : index
    %c0_1 = arith.constant 0 : index
    %c0_2 = arith.constant 0 : index
    %10 = vector.load %arg2[%c0_0, %c0_1, %c0_2] : memref<2x32x32xf32, #tpu.memory_space<vmem>>, vector<2x32x32xf32>
    %c0_3 = arith.constant 0 : index
    %c0_4 = arith.constant 0 : index
    %c0_5 = arith.constant 0 : index
    %11 = vector.load %arg3[%c0_3, %c0_4, %c0_5] : memref<2x32x16xf32, #tpu.memory_space<vmem>>, vector<2x32x16xf32>
    %12 = tpu.iota {dimensions = array<i32: 0>} : vector<32x32xi32>
    %13 = tpu.iota {dimensions = array<i32: 1>} : vector<32x32xi32>
    %c0_i32 = arith.constant 0 : i32
    %14 = vector.broadcast %c0_i32 : i32 to vector<32x32xi32>
    %15 = arith.addi %12, %14 : vector<32x32xi32>
    %16 = arith.cmpi eq, %15, %13 : vector<32x32xi32>
    %17 = arith.extui %16 : vector<32x32xi1> to vector<32x32xi32>
    %18 = arith.sitofp %17 : vector<32x32xi32> to vector<32x32xf32>
    %19 = vector.broadcast %0 : f32 to vector<2x32x32xf32>
    %20 = arith.mulf %10, %19 : vector<2x32x32xf32>
    %21 = vector.shape_cast %18 : vector<32x32xf32> to vector<1x32x32xf32>
    %22 = vector.broadcast %21 : vector<1x32x32xf32> to vector<2x32x32xf32>
    %23 = arith.addf %22, %20 : vector<2x32x32xf32>
    %24 = vector.broadcast %1 : f32 to vector<2x32x32xf32>
    %25 = arith.mulf %24, %20 : vector<2x32x32xf32>
    "tpu.trace_start"() <{level = 10 : i32, message = "bij,bjk->bik"}> : () -> ()
    %cst = arith.constant dense<0.000000e+00> : vector<2x32x32xf32>
    %26 = tpu.matmul %20, %20, %cst {dimension_numbers = #tpu.dot_dimension_numbers<[2], [1], [1], [2], [0, 0, 0, 1, 1, 2], [0], [0]>} : vector<2x32x32xf32>, vector<2x32x32xf32>, vector<2x32x32xf32> -> vector<2x32x32xf32>
    "tpu.trace_stop"() : () -> ()
    %cst_6 = arith.constant 5.000000e-01 : f32
    %27 = vector.broadcast %cst_6 : f32 to vector<2x32x32xf32>
    %28 = arith.mulf %26, %27 : vector<2x32x32xf32>
    %29 = arith.addf %23, %28 : vector<2x32x32xf32>
    %30 = vector.broadcast %2 : f32 to vector<2x32x32xf32>
    %31 = arith.mulf %30, %26 : vector<2x32x32xf32>
    %32 = arith.addf %25, %31 : vector<2x32x32xf32>
    "tpu.trace_start"() <{level = 10 : i32, message = "bij,bjk->bik"}> : () -> ()
    %cst_7 = arith.constant dense<0.000000e+00> : vector<2x32x32xf32>
    %33 = tpu.matmul %26, %20, %cst_7 {dimension_numbers = #tpu.dot_dimension_numbers<[2], [1], [1], [2], [0, 0, 0, 1, 1, 2], [0], [0]>} : vector<2x32x32xf32>, vector<2x32x32xf32>, vector<2x32x32xf32> -> vector<2x32x32xf32>
    "tpu.trace_stop"() : () -> ()
    %cst_8 = arith.constant 0.166666672 : f32
    %34 = vector.broadcast %cst_8 : f32 to vector<2x32x32xf32>
    %35 = arith.mulf %33, %34 : vector<2x32x32xf32>
    %36 = arith.addf %29, %35 : vector<2x32x32xf32>
    %37 = vector.broadcast %3 : f32 to vector<2x32x32xf32>
    %38 = arith.mulf %37, %33 : vector<2x32x32xf32>
    %39 = arith.addf %32, %38 : vector<2x32x32xf32>
    "tpu.trace_start"() <{level = 10 : i32, message = "bij,bjk->bik"}> : () -> ()
    %cst_9 = arith.constant dense<0.000000e+00> : vector<2x32x32xf32>
    %40 = tpu.matmul %26, %26, %cst_9 {dimension_numbers = #tpu.dot_dimension_numbers<[2], [1], [1], [2], [0, 0, 0, 1, 1, 2], [0], [0]>} : vector<2x32x32xf32>, vector<2x32x32xf32>, vector<2x32x32xf32> -> vector<2x32x32xf32>
    "tpu.trace_stop"() : () -> ()
    %cst_10 = arith.constant 0.0416666679 : f32
    %41 = vector.broadcast %cst_10 : f32 to vector<2x32x32xf32>
    %42 = arith.mulf %40, %41 : vector<2x32x32xf32>
    %43 = arith.addf %36, %42 : vector<2x32x32xf32>
    %44 = vector.broadcast %4 : f32 to vector<2x32x32xf32>
    %45 = arith.mulf %44, %40 : vector<2x32x32xf32>
    %46 = arith.addf %39, %45 : vector<2x32x32xf32>
    "tpu.trace_start"() <{level = 10 : i32, message = "bij,bjk->bik"}> : () -> ()
    %cst_11 = arith.constant dense<0.000000e+00> : vector<2x32x32xf32>
    %47 = tpu.matmul %40, %20, %cst_11 {dimension_numbers = #tpu.dot_dimension_numbers<[2], [1], [1], [2], [0, 0, 0, 1, 1, 2], [0], [0]>} : vector<2x32x32xf32>, vector<2x32x32xf32>, vector<2x32x32xf32> -> vector<2x32x32xf32>
    "tpu.trace_stop"() : () -> ()
    %cst_12 = arith.constant 0.00833333377 : f32
    %48 = vector.broadcast %cst_12 : f32 to vector<2x32x32xf32>
    %49 = arith.mulf %47, %48 : vector<2x32x32xf32>
    %50 = arith.addf %43, %49 : vector<2x32x32xf32>
    %51 = vector.broadcast %5 : f32 to vector<2x32x32xf32>
    %52 = arith.mulf %51, %47 : vector<2x32x32xf32>
    %53 = arith.addf %46, %52 : vector<2x32x32xf32>
    "tpu.trace_start"() <{level = 10 : i32, message = "bij,bjk->bik"}> : () -> ()
    %cst_13 = arith.constant dense<0.000000e+00> : vector<2x32x32xf32>
    %54 = tpu.matmul %40, %26, %cst_13 {dimension_numbers = #tpu.dot_dimension_numbers<[2], [1], [1], [2], [0, 0, 0, 1, 1, 2], [0], [0]>} : vector<2x32x32xf32>, vector<2x32x32xf32>, vector<2x32x32xf32> -> vector<2x32x32xf32>
    "tpu.trace_stop"() : () -> ()
    %cst_14 = arith.constant 0.00138888892 : f32
    %55 = vector.broadcast %cst_14 : f32 to vector<2x32x32xf32>
    %56 = arith.mulf %54, %55 : vector<2x32x32xf32>
    %57 = arith.addf %50, %56 : vector<2x32x32xf32>
    %58 = vector.broadcast %6 : f32 to vector<2x32x32xf32>
    %59 = arith.mulf %58, %54 : vector<2x32x32xf32>
    %60 = arith.addf %53, %59 : vector<2x32x32xf32>
    "tpu.trace_start"() <{level = 10 : i32, message = "bij,bjk->bik"}> : () -> ()
    %cst_15 = arith.constant dense<0.000000e+00> : vector<2x32x32xf32>
    %61 = tpu.matmul %40, %33, %cst_15 {dimension_numbers = #tpu.dot_dimension_numbers<[2], [1], [1], [2], [0, 0, 0, 1, 1, 2], [0], [0]>} : vector<2x32x32xf32>, vector<2x32x32xf32>, vector<2x32x32xf32> -> vector<2x32x32xf32>
    "tpu.trace_stop"() : () -> ()
    %cst_16 = arith.constant 1.98412701E-4 : f32
    %62 = vector.broadcast %cst_16 : f32 to vector<2x32x32xf32>
    %63 = arith.mulf %61, %62 : vector<2x32x32xf32>
    %64 = arith.addf %57, %63 : vector<2x32x32xf32>
    %65 = vector.broadcast %7 : f32 to vector<2x32x32xf32>
    %66 = arith.mulf %65, %61 : vector<2x32x32xf32>
    %67 = arith.addf %60, %66 : vector<2x32x32xf32>
    "tpu.trace_start"() <{level = 10 : i32, message = "bij,bjk->bik"}> : () -> ()
    %cst_17 = arith.constant dense<0.000000e+00> : vector<2x32x32xf32>
    %68 = tpu.matmul %40, %40, %cst_17 {dimension_numbers = #tpu.dot_dimension_numbers<[2], [1], [1], [2], [0, 0, 0, 1, 1, 2], [0], [0]>} : vector<2x32x32xf32>, vector<2x32x32xf32>, vector<2x32x32xf32> -> vector<2x32x32xf32>
    "tpu.trace_stop"() : () -> ()
    %cst_18 = arith.constant 2.48015876E-5 : f32
    %69 = vector.broadcast %cst_18 : f32 to vector<2x32x32xf32>
    %70 = arith.mulf %68, %69 : vector<2x32x32xf32>
    %71 = arith.addf %64, %70 : vector<2x32x32xf32>
    %72 = vector.broadcast %8 : f32 to vector<2x32x32xf32>
    %73 = arith.mulf %72, %68 : vector<2x32x32xf32>
    %74 = arith.addf %67, %73 : vector<2x32x32xf32>
    "tpu.trace_start"() <{level = 10 : i32, message = "bij,bjk->bik"}> : () -> ()
    %cst_19 = arith.constant dense<0.000000e+00> : vector<2x32x32xf32>
    %75 = tpu.matmul %68, %20, %cst_19 {dimension_numbers = #tpu.dot_dimension_numbers<[2], [1], [1], [2], [0, 0, 0, 1, 1, 2], [0], [0]>} : vector<2x32x32xf32>, vector<2x32x32xf32>, vector<2x32x32xf32> -> vector<2x32x32xf32>
    "tpu.trace_stop"() : () -> ()
    %cst_20 = arith.constant 2.75573188E-6 : f32
    %76 = vector.broadcast %cst_20 : f32 to vector<2x32x32xf32>
    %77 = arith.mulf %75, %76 : vector<2x32x32xf32>
    %78 = arith.addf %71, %77 : vector<2x32x32xf32>
    %79 = vector.broadcast %9 : f32 to vector<2x32x32xf32>
    %80 = arith.mulf %79, %75 : vector<2x32x32xf32>
    %81 = arith.addf %74, %80 : vector<2x32x32xf32>
    "tpu.trace_start"() <{level = 10 : i32, message = "bij,bjk->bik"}> : () -> ()
    %cst_21 = arith.constant dense<0.000000e+00> : vector<2x32x32xf32>
    %82 = tpu.matmul %68, %26, %cst_21 {dimension_numbers = #tpu.dot_dimension_numbers<[2], [1], [1], [2], [0, 0, 0, 1, 1, 2], [0], [0]>} : vector<2x32x32xf32>, vector<2x32x32xf32>, vector<2x32x32xf32> -> vector<2x32x32xf32>
    "tpu.trace_stop"() : () -> ()
    %cst_22 = arith.constant 2.755732E-7 : f32
    %83 = vector.broadcast %cst_22 : f32 to vector<2x32x32xf32>
    %84 = arith.mulf %82, %83 : vector<2x32x32xf32>
    %85 = arith.addf %78, %84 : vector<2x32x32xf32>
    %86 = vector.broadcast %0 : f32 to vector<2x32x16xf32>
    %87 = arith.mulf %86, %11 : vector<2x32x16xf32>
    "tpu.trace_start"() <{level = 10 : i32, message = "bij,bjk->bik"}> : () -> ()
    %cst_23 = arith.constant dense<0.000000e+00> : vector<2x32x16xf32>
    %88 = tpu.matmul %81, %11, %cst_23 {dimension_numbers = #tpu.dot_dimension_numbers<[2], [1], [1], [2], [0, 0, 0, 1, 1, 2], [0], [0]>} : vector<2x32x32xf32>, vector<2x32x16xf32>, vector<2x32x16xf32> -> vector<2x32x16xf32>
    "tpu.trace_stop"() : () -> ()
    %89 = arith.addf %87, %88 : vector<2x32x16xf32>
    %c0_24 = arith.constant 0 : index
    %c0_25 = arith.constant 0 : index
    %c0_26 = arith.constant 0 : index
    %90 = vector.load %arg4[%c0_24, %c0_25, %c0_26] : memref<2x32x32xf32, #tpu.memory_space<vmem>>, vector<2x32x32xf32>
    tpu.vector_store %arg4[%c0_24, %c0_25, %c0_26], %85 {strides = array<i32>} : memref<2x32x32xf32, #tpu.memory_space<vmem>>, vector<2x32x32xf32>,
    %c0_27 = arith.constant 0 : index
    %c0_28 = arith.constant 0 : index
    %c0_29 = arith.constant 0 : index
    %91 = vector.load %arg5[%c0_27, %c0_28, %c0_29] : memref<2x32x16xf32, #tpu.memory_space<vmem>>, vector<2x32x16xf32>
    tpu.vector_store %arg5[%c0_27, %c0_28, %c0_29], %89 {strides = array<i32>} : memref<2x32x16xf32, #tpu.memory_space<vmem>>, vector<2x32x16xf32>,
    return
  }
  func.func @transform_0(%arg0: i32) -> i32 {
    %c0_i32 = arith.constant 0 : i32
    %c0_i32_0 = arith.constant 0 : i32
    return %c0_i32 : i32
  }
  func.func @transform_1(%arg0: i32) -> (i32, i32, i32) {
    %c0_i32 = arith.constant 0 : i32
    %c0_i32_0 = arith.constant 0 : i32
    %c0_i32_1 = arith.constant 0 : i32
    return %arg0, %c0_i32, %c0_i32_0 : i32, i32, i32
  }
  func.func @transform_2(%arg0: i32) -> (i32, i32, i32) {
    %c0_i32 = arith.constant 0 : i32
    %c0_i32_0 = arith.constant 0 : i32
    %c0_i32_1 = arith.constant 0 : i32
    return %arg0, %c0_i32, %c0_i32_0 : i32, i32, i32
  }
  func.func @transform_3(%arg0: i32) -> (i32, i32, i32) {
    %c0_i32 = arith.constant 0 : i32
    %c0_i32_0 = arith.constant 0 : i32
    %c0_i32_1 = arith.constant 0 : i32
    return %arg0, %c0_i32, %c0_i32_0 : i32, i32, i32
  }
  func.func @transform_4(%arg0: i32) -> (i32, i32, i32) {
    %c0_i32 = arith.constant 0 : i32
    %c0_i32_0 = arith.constant 0 : i32
    %c0_i32_1 = arith.constant 0 : i32
    return %arg0, %c0_i32, %c0_i32_0 : i32, i32, i32
  }
}

</mosaic_0001>

<bundles_post_ra>
// kernel: tpu_custom_call.1
= control target key start
LH: loop header
LB: loop body
LE: loop exit
PB: predicated region body
PF: predicated region fallthrough
CT: control target
= control target key end

     0   :  { %10 = vsyncpa [#allocation4], 0  ;;  %s2018_s0 = inlined_call_operand.vmem [shape: f32[10], index: 0, kind: input, shape index: {}]   ;;  %s2019_s1 = inlined_call_operand.vmem [shape: f32[2,32,32], index: 1, kind: input, shape index: {}]   ;;  %s2020_s2 = inlined_call_operand.vmem [shape: f32[2,32,16], index: 2, kind: input, shape index: {}]   ;;  %s2021_s3 = inlined_call_operand.hbm [shape: f32[2,32,32], index: 3, kind: output, shape index: {0}]   ;;  %s2022_s4 = inlined_call_operand.vmem [shape: f32[2,32,16], index: 4, kind: output, shape index: {1}]  }
   0x1   :  { %11 = vsyncpa [#allocation3], 0  ;;  %s17_s17 = sshll.u32 %s2018_s0, 4  ;;  %s1276_s18 = smov [#allocation2]   ;;  %s18_s17 = int_to_ptr.vmem [resolvable:$true] %s17_s17 }
   0x2   :  { %20 = dma.vmem_to_smem %s18_s17, 16, %s1276_s18, [#allocation4]  }
   0x3   :  { %1272 = dma.done.wait [#allocation4], 16  }
   0x4   :  { %1273 = vsyncadd [#allocation4], 4294967280 }
   0x5   :  { %29 = sfence }
   0x6   :  { %s30_s19 = sld [smem:[#allocation2]]  ;;  %v43_v0 = vld [vmem:[%s2019_s1 + $0x18] sm:$0xff]  ;;  %v42_v2 = vld [vmem:[%s2019_s1 + $0x10] sm:$0xff]  ;;  %v41_v5 = vld [vmem:[%s2019_s1 + $0x8] sm:$0xff]  ;;  %vm101_vm0 = vcmask 261120   ;;  %v56_v27 = vlaneseq  ;;  %v2023_v33 = vmov 0.0  }
   0x7   :  { %v47_v1 = vld [vmem:[%s2019_s1 + $0x38] sm:$0xff]  ;;  %v46_v3 = vld [vmem:[%s2019_s1 + $0x30] sm:$0xff]  ;;  %v45_v6 = vld [vmem:[%s2019_s1 + $0x28] sm:$0xff]  ;;  %s1139_s9 = sld [smem:[#allocation2 + $0x2]]  ;;  %vm1106_vm5 = vcmask 130048  }
   0x8   :  { %v40_v11 = vld [vmem:[%s2019_s1] sm:$0xff]  ;;  %v1471_v30 = vshrl.u32 %v56_v27, 7  ;;  %v1473_v31 = vand.u32 127, %v56_v27  ;;  %s1140_s10 = sld [smem:[#allocation2 + $0x3]] }
   0x9   :  { %v44_v12 = vld [vmem:[%s2019_s1 + $0x20] sm:$0xff]  ;;  %s1138_s1 = sld [smem:[#allocation2 + $0x1]] }
   0xa   :  { %v58_v32 = vadd.s32 8, %v1471_v30  ;;  %vm63_vm1 = vcmp.eq.s32.totalorder %v1471_v30, %v1473_v31  ;;  %v59_v38 = vadd.s32 16, %v1471_v30  ;;  %s1141_s11 = sld [smem:[#allocation2 + $0x4]] }
   0xb   :  { %v1147_v34 = vsel %vm63_vm1, 1.0, %v2023_v33  ;;  %s1142_s12 = sld [smem:[#allocation2 + $0x5]] }
   0xc   :  { %v1321_v4 = vstv %s30_s19  ;;  %vm64_vm2 = vcmp.eq.s32.totalorder %v58_v32, %v1473_v31  ;;  %vm65_vm3 = vcmp.eq.s32.totalorder %v59_v38, %v1473_v31  ;;  %s1143_s13 = sld [smem:[#allocation2 + $0x6]] }
   0xd   :  { %v1330_v7 = vmul.f32 %v1321_v4, %v43_v0  ;;  %v1333_v8 = vmul.f32 %v1321_v4, %v47_v1  ;;  %v1336_v9 = vmul.f32 %v1321_v4, %v42_v2  ;;  %v1339_v10 = vmul.f32 %v1321_v4, %v46_v3  ;;  %s1144_s14 = sld [smem:[#allocation2 + $0x7]] }
   0xe   :  { %v1350_v13 = vmul.f32 %v1321_v4, %v41_v5  ;;  %v1353_v14 = vmul.f32 %v1321_v4, %v45_v6  ;;  %v1360_v15 = vmul.f32 %v1321_v4, %v40_v11  ;;  %v1363_v16 = vmul.f32 %v1321_v4, %v44_v12  ;;  %s1145_s15 = sld [smem:[#allocation2 + $0x8]] }
   0xf   :  { %126 = vmatpush.msra.mxu0 %v1330_v7  ;;  %167 = vmatpush.msra.mxu1 %v1333_v8  ;;  %v1479_v35 = vstv %s1138_s1  ;;  %v1487_v39 = vstv %s1139_s9  ;;  %v1148_v42 = vsel %vm64_vm2, 1.0, %v2023_v33  ;;  %v1494_v44 = vstv %s1140_s10  ;;  %s1146_s5 = sld [smem:[#allocation2 + $0x9]]  ;;  %s1121_s1 = sshll.u32 %s2021_s3, 4  ;;  %s1122_s1 = int_to_ptr.hbm [resolvable:$true] %s1121_s1 }
  0x10   :  { %241 = vmatpush.msra.mxu2 %v1330_v7  ;;  %282 = vmatpush.msra.mxu3 %v1333_v8  ;;  %v84_v40 = vadd.f32 %v1147_v34, %v1360_v15  ;;  %v93_v41 = vmul.f32 %v1479_v35, %v1360_v15  ;;  %v88_v45 = vadd.f32 %v1147_v34, %v1363_v16  ;;  %v1149_v59 = vsel %vm65_vm3, 1.0, %v2023_v33  ;;  %s1279_s9 = smov 128   ;;  %s1280_s10 = smov 8  }
  0x11   :  { %127 = vmatpush.msra.mxu0 %v1336_v9  ;;  %168 = vmatpush.msra.mxu1 %v1339_v10  ;;  %v97_v46 = vmul.f32 %v1479_v35, %v1363_v16  ;;  %v85_v50 = vadd.f32 %v1148_v42, %v1350_v13  ;;  %v94_v51 = vmul.f32 %v1479_v35, %v1350_v13  ;;  %v1524_v1 = vstv %s1141_s11 }
  0x12   :  { %242 = vmatpush.msra.mxu2 %v1336_v9  ;;  %283 = vmatpush.msra.mxu3 %v1339_v10  ;;  %v89_v57 = vadd.f32 %v1148_v42, %v1353_v14  ;;  %v98_v58 = vmul.f32 %v1479_v35, %v1353_v14 }
  0x13   :  { %128 = vmatpush.msra.mxu0 %v1350_v13  ;;  %169 = vmatpush.msra.mxu1 %v1353_v14 }
  0x14   :  { %243 = vmatpush.msra.mxu2 %v1350_v13  ;;  %284 = vmatpush.msra.mxu3 %v1353_v14 }
  0x15   :  { %129 = vmatpush.msra.mxu0 %v1360_v15  ;;  %170 = vmatpush.msra.mxu1 %v1363_v16 }
  0x16   :  { %1151 = vmatmul.msk.f32.vlgmr.msra.gmra.mxu0 %vm101_vm0, %v1360_v15  ;;  %1155 = vmatmul.msk.f32.vlgmr.msra.gmra.mxu1 %vm101_vm0, %v1363_v16 }
  0x17   :  { %244 = vmatpush.msra.mxu2 %v1360_v15  ;;  %285 = vmatpush.msra.mxu3 %v1363_v16 }
  0x19   :  { %447 = vmatpush.msrb.mxu2 %v1330_v7  ;;  %488 = vmatpush.msrb.mxu3 %v1333_v8 }
  0x1b   :  { %448 = vmatpush.msrb.mxu2 %v1336_v9  ;;  %489 = vmatpush.msrb.mxu3 %v1339_v10 }
  0x1d   :  { %449 = vmatpush.msrb.mxu2 %v1350_v13  ;;  %490 = vmatpush.msrb.mxu3 %v1353_v14 }
  0x1e   :  { %1152 = vmatmul.msk.f32.gmra.mxu0 %vm101_vm0, %v1350_v13  ;;  %1156 = vmatmul.msk.f32.gmra.mxu1 %vm101_vm0, %v1353_v14 }
  0x1f   :  { %450 = vmatpush.msrb.mxu2 %v1360_v15  ;;  %491 = vmatpush.msrb.mxu3 %v1363_v16 }
  0x26   :  { %1153 = vmatmul.msk.f32.gmra.mxu0 %vm101_vm0, %v1336_v9  ;;  %1157 = vmatmul.msk.f32.gmra.mxu1 %vm101_vm0, %v1339_v10 }
  0x2e   :  { %1154 = vmatmul.msk.f32.gmra.mxu0 %vm101_vm0, %v1330_v7  ;;  %1158 = vmatmul.msk.f32.gmra.mxu1 %vm101_vm0, %v1333_v8 }
  0x93   :  { %v1399_v17 = vpop.f32.mrf.mxu0  ;;  %v1401_v18 = vpop.f32.mrf.mxu1 }
  0x94   :  { %1159 = vmatmul.msk.f32.vlgmr.msra.gmra.mxu2 %vm101_vm0, %v1399_v17  ;;  %1163 = vmatmul.msk.f32.vlgmr.msra.gmra.mxu3 %vm101_vm0, %v1401_v18  ;;  %v184_v43 = vmul.f32 0.5, %v1399_v17  ;;  %v201_v47 = vmul.f32 %v1487_v39, %v1399_v17  ;;  %v188_v48 = vmul.f32 0.5, %v1401_v18  ;;  %v205_v49 = vmul.f32 %v1487_v39, %v1401_v18 }
  0x96   :  { %v192_v56 = vadd.f32 %v184_v43, %v84_v40  ;;  %v209_v62 = vadd.f32 %v201_v47, %v93_v41  ;;  %v196_v63 = vadd.f32 %v188_v48, %v88_v45  ;;  %v213_v0 = vadd.f32 %v205_v49, %v97_v46 }
  0x9b   :  { %v1407_v19 = vpop.f32.mrf.mxu0  ;;  %v1409_v20 = vpop.f32.mrf.mxu1 }
  0x9c   :  { %1160 = vmatmul.msk.f32.gmra.mxu2 %vm101_vm0, %v1407_v19  ;;  %1164 = vmatmul.msk.f32.gmra.mxu3 %vm101_vm0, %v1409_v20  ;;  %v185_v2 = vmul.f32 0.5, %v1407_v19  ;;  %v202_v3 = vmul.f32 %v1487_v39, %v1407_v19  ;;  %v189_v5 = vmul.f32 0.5, %v1409_v20  ;;  %v206_v6 = vmul.f32 %v1487_v39, %v1409_v20 }
  0xa3   :  { %v1415_v21 = vpop.f32.mrf.mxu0  ;;  %v1417_v22 = vpop.f32.mrf.mxu1 }
  0xa4   :  { %1161 = vmatmul.msk.f32.gmra.mxu2 %vm101_vm0, %v1415_v21  ;;  %1165 = vmatmul.msk.f32.gmra.mxu3 %vm101_vm0, %v1417_v22 }
  0xab   :  { %v1423_v23 = vpop.f32.mrf.mxu0  ;;  %v1425_v24 = vpop.f32.mrf.mxu1 }
  0xac   :  { %1162 = vmatmul.msk.f32.gmra.mxu2 %vm101_vm0, %v1423_v23  ;;  %1166 = vmatmul.msk.f32.gmra.mxu3 %vm101_vm0, %v1425_v24 }
  0xad   :  { %344 = vmatpush.msrb.mxu0 %v1423_v23  ;;  %373 = vmatpush.msrb.mxu1 %v1425_v24 }
  0xaf   :  { %345 = vmatpush.msrb.mxu0 %v1415_v21  ;;  %374 = vmatpush.msrb.mxu1 %v1417_v22 }
  0xb1   :  { %346 = vmatpush.msrb.mxu0 %v1407_v19  ;;  %375 = vmatpush.msrb.mxu1 %v1409_v20 }
  0xb3   :  { %347 = vmatpush.msrb.mxu0 %v1399_v17  ;;  %376 = vmatpush.msrb.mxu1 %v1401_v18 }
  0xb4   :  { %1167 = vmatmul.msk.f32.vlgmr.msrb.gmra.mxu0 %vm101_vm0, %v1399_v17  ;;  %1171 = vmatmul.msk.f32.vlgmr.msrb.gmra.mxu1 %vm101_vm0, %v1401_v18 }
  0xb5   :  { %550 = vmatpush.msra.mxu0 %v1423_v23  ;;  %579 = vmatpush.msra.mxu1 %v1425_v24 }
  0xb7   :  { %551 = vmatpush.msra.mxu0 %v1415_v21  ;;  %580 = vmatpush.msra.mxu1 %v1417_v22 }
  0xb9   :  { %552 = vmatpush.msra.mxu0 %v1407_v19  ;;  %581 = vmatpush.msra.mxu1 %v1409_v20 }
  0xbb   :  { %553 = vmatpush.msra.mxu0 %v1399_v17  ;;  %582 = vmatpush.msra.mxu1 %v1401_v18 }
  0xbc   :  { %1168 = vmatmul.msk.f32.gmra.mxu0 %vm101_vm0, %v1407_v19  ;;  %1172 = vmatmul.msk.f32.gmra.mxu1 %vm101_vm0, %v1409_v20 }
  0xc4   :  { %1169 = vmatmul.msk.f32.gmra.mxu0 %vm101_vm0, %v1415_v21  ;;  %1173 = vmatmul.msk.f32.gmra.mxu1 %vm101_vm0, %v1417_v22 }
  0xcc   :  { %1170 = vmatmul.msk.f32.gmra.mxu0 %vm101_vm0, %v1423_v23  ;;  %1174 = vmatmul.msk.f32.gmra.mxu1 %vm101_vm0, %v1425_v24 }
 0x117   :  { %v1463_v25 = vpop.f32.mrf.mxu2  ;;  %v1465_v26 = vpop.f32.mrf.mxu3 }
 0x118   :  { %v299_v52 = vmul.f32 0.16666667, %v1463_v25  ;;  %v316_v53 = vmul.f32 %v1494_v44, %v1463_v25  ;;  %v303_v54 = vmul.f32 0.16666667, %v1465_v26  ;;  %v320_v55 = vmul.f32 %v1494_v44, %v1465_v26 }
 0x11a   :  { %v307_v27 = vadd.f32 %v299_v52, %v192_v56  ;;  %v324_v32 = vadd.f32 %v316_v53, %v209_v62  ;;  %v311_v34 = vadd.f32 %v303_v54, %v196_v63  ;;  %v328_v38 = vadd.f32 %v320_v55, %v213_v0 }
 0x11b   :  { %v193_v55 = vadd.f32 %v185_v2, %v85_v50  ;;  %v210_v56 = vadd.f32 %v202_v3, %v94_v51  ;;  %v197_v62 = vadd.f32 %v189_v5, %v89_v57  ;;  %v214_v63 = vadd.f32 %v206_v6, %v98_v58 }
 0x11c   :  { %v86_v0 = vadd.f32 %v1149_v59, %v1336_v9  ;;  %v186_v57 = vmul.f32 0.5, %v1415_v21  ;;  %v190_v6 = vmul.f32 0.5, %v1417_v22 }
 0x11f   :  { %v1467_v28 = vpop.f32.mrf.mxu2  ;;  %v1469_v29 = vpop.f32.mrf.mxu3 }
 0x120   :  { %v300_v45 = vmul.f32 0.16666667, %v1467_v28  ;;  %v317_v46 = vmul.f32 %v1494_v44, %v1467_v28  ;;  %v304_v47 = vmul.f32 0.16666667, %v1469_v29  ;;  %v321_v48 = vmul.f32 %v1494_v44, %v1469_v29 }
 0x122   :  { %v308_v33 = vadd.f32 %v300_v45, %v193_v55  ;;  %v325_v50 = vadd.f32 %v317_v46, %v210_v56  ;;  %v329_v51 = vadd.f32 %v321_v48, %v214_v63 }
 0x127   :  { %v1482_v36 = vpop.f32.mrf.mxu2  ;;  %v1484_v37 = vpop.f32.mrf.mxu3 }
 0x128   :  { %v301_v5 = vmul.f32 0.16666667, %v1482_v36  ;;  %v318_v45 = vmul.f32 %v1494_v44, %v1482_v36  ;;  %v305_v46 = vmul.f32 0.16666667, %v1484_v37 }
 0x12f   :  { %v1518_v60 = vpop.f32.mrf.mxu2  ;;  %v1520_v61 = vpop.f32.mrf.mxu3 }
 0x130   :  { %641 = vmatpush.msra.mxu2 %v1518_v60  ;;  %670 = vmatpush.msra.mxu3 %v1520_v61 }
 0x131   :  { %v1532_v11 = vpop.f32.mrf.mxu0  ;;  %v1534_v12 = vpop.f32.mrf.mxu1 }
 0x132   :  { %1175 = vmatmul.msk.f32.vlgmr.msrb.gmra.mxu2 %vm101_vm0, %v1532_v11  ;;  %1179 = vmatmul.msk.f32.vlgmr.msrb.gmra.mxu3 %vm101_vm0, %v1534_v12  ;;  %v390_v40 = vmul.f32 0.041666668, %v1532_v11  ;;  %v407_v41 = vmul.f32 %v1524_v1, %v1532_v11  ;;  %v394_v42 = vmul.f32 0.041666668, %v1534_v12  ;;  %v411_v43 = vmul.f32 %v1524_v1, %v1534_v12 }
 0x133   :  { %1183 = vmatmul.msk.f32.vlgmr.msra.gmra.mxu0 %vm101_vm0, %v1532_v11  ;;  %1187 = vmatmul.msk.f32.vlgmr.msra.gmra.mxu1 %vm101_vm0, %v1534_v12 }
 0x134   :  { %642 = vmatpush.msra.mxu2 %v1482_v36  ;;  %671 = vmatpush.msra.mxu3 %v1484_v37  ;;  %v1558_v49 = vadd.f32 %v390_v40, %v307_v27  ;;  %v1560_v52 = vadd.f32 %v407_v41, %v324_v32  ;;  %v1562_v53 = vadd.f32 %v394_v42, %v311_v34 }
 0x135   :  { %v1564_v54 = vadd.f32 %v411_v43, %v328_v38  ;;  %v95_v27 = vmul.f32 %v1479_v35, %v1336_v9  ;;  %v90_v32 = vadd.f32 %v1149_v59, %v1339_v10  ;;  %v99_v34 = vmul.f32 %v1479_v35, %v1339_v10 }
 0x136   :  { %643 = vmatpush.msra.mxu2 %v1467_v28  ;;  %672 = vmatpush.msra.mxu3 %v1469_v29  ;;  %v312_v28 = vadd.f32 %v304_v47, %v197_v62  ;;  %v207_v38 = vmul.f32 %v1487_v39, %v1417_v22  ;;  %v322_v47 = vmul.f32 %v1494_v44, %v1484_v37 }
 0x137   :  { %v198_v55 = vadd.f32 %v190_v6, %v90_v32 }
 0x138   :  { %644 = vmatpush.msra.mxu2 %v1463_v25  ;;  %673 = vmatpush.msra.mxu3 %v1465_v26  ;;  %v203_v26 = vmul.f32 %v1487_v39, %v1415_v21  ;;  %v215_v56 = vadd.f32 %v207_v38, %v99_v34 }
 0x139   :  { %v1577_v58 = vpop.f32.mrf.mxu0  ;;  %v1579_v29 = vpop.f32.mrf.mxu1  ;;  %v313_v36 = vadd.f32 %v305_v46, %v198_v55 }
 0x13a   :  { %835 = vmatpush.msrb.mxu2 %v1330_v7  ;;  %v391_v59 = vmul.f32 0.041666668, %v1577_v58  ;;  %v408_v25 = vmul.f32 %v1524_v1, %v1577_v58  ;;  %v395_v2 = vmul.f32 0.041666668, %v1579_v29  ;;  %v412_v3 = vmul.f32 %v1524_v1, %v1579_v29  ;;  %876 = vmatpush.msrb.mxu3 %v1333_v8 }
 0x13b   :  { %1176 = vmatmul.msk.f32.gmra.mxu2 %vm101_vm0, %v1577_v58  ;;  %1180 = vmatmul.msk.f32.gmra.mxu3 %vm101_vm0, %v1579_v29  ;;  %v211_v48 = vadd.f32 %v203_v26, %v95_v27 }
 0x13c   :  { %1184 = vmatmul.msk.f32.gmra.mxu0 %vm101_vm0, %v1577_v58  ;;  %1188 = vmatmul.msk.f32.gmra.mxu1 %vm101_vm0, %v1579_v29  ;;  %v1603_v40 = vadd.f32 %v391_v59, %v308_v33  ;;  %v1605_v41 = vadd.f32 %v408_v25, %v325_v50  ;;  %v1607_v42 = vadd.f32 %v395_v2, %v312_v28 }
 0x13d   :  { %v1609_v43 = vadd.f32 %v412_v3, %v329_v51  ;;  %836 = vmatpush.msrb.mxu2 %v1336_v9  ;;  %877 = vmatpush.msrb.mxu3 %v1339_v10  ;;  %v194_v33 = vadd.f32 %v186_v57, %v86_v0  ;;  %v326_v63 = vadd.f32 %v318_v45, %v211_v48 }
 0x13e   :  { %v330_v50 = vadd.f32 %v322_v47, %v215_v56 }
 0x13f   :  { %837 = vmatpush.msrb.mxu2 %v1350_v13  ;;  %878 = vmatpush.msrb.mxu3 %v1353_v14  ;;  %v309_v62 = vadd.f32 %v301_v5, %v194_v33 }
 0x141   :  { %v355_v28 = vpop.f32.mrf.mxu0  ;;  %v384_v51 = vpop.f32.mrf.mxu1  ;;  %838 = vmatpush.msrb.mxu2 %v1360_v15  ;;  %879 = vmatpush.msrb.mxu3 %v1363_v16 }
 0x142   :  { %v392_v9 = vmul.f32 0.041666668, %v355_v28  ;;  %v409_v10 = vmul.f32 %v1524_v1, %v355_v28  ;;  %v396_v37 = vmul.f32 0.041666668, %v384_v51  ;;  %v413_v13 = vmul.f32 %v1524_v1, %v384_v51 }
 0x143   :  { %1177 = vmatmul.msk.f32.gmra.mxu2 %vm101_vm0, %v355_v28  ;;  %1181 = vmatmul.msk.f32.gmra.mxu3 %vm101_vm0, %v384_v51 }
 0x144   :  { %1185 = vmatmul.msk.f32.gmra.mxu0 %vm101_vm0, %v355_v28  ;;  %1189 = vmatmul.msk.f32.gmra.mxu1 %vm101_vm0, %v384_v51  ;;  %v1628_v14 = vadd.f32 %v392_v9, %v309_v62  ;;  %v1630_v0 = vadd.f32 %v409_v10, %v326_v63  ;;  %v1632_v15 = vadd.f32 %v396_v37, %v313_v36 }
 0x145   :  { %v1634_v16 = vadd.f32 %v413_v13, %v330_v50 }
 0x149   :  { %v1636_v27 = vpop.f32.mrf.mxu0  ;;  %v1638_v32 = vpop.f32.mrf.mxu1 }
 0x14a   :  { %732 = vmatpush.msrb.mxu0 %v1636_v27  ;;  %761 = vmatpush.msrb.mxu1 %v1638_v32 }
 0x14b   :  { %1178 = vmatmul.msk.f32.gmra.mxu2 %vm101_vm0, %v1636_v27  ;;  %1182 = vmatmul.msk.f32.gmra.mxu3 %vm101_vm0, %v1638_v32 }
 0x14c   :  { %1186 = vmatmul.msk.f32.gmra.mxu0 %vm101_vm0, %v1636_v27  ;;  %1190 = vmatmul.msk.f32.gmra.mxu1 %vm101_vm0, %v1638_v32 }
 0x14d   :  { %733 = vmatpush.msrb.mxu0 %v355_v28  ;;  %762 = vmatpush.msrb.mxu1 %v384_v51 }
 0x14f   :  { %734 = vmatpush.msrb.mxu0 %v1577_v58  ;;  %763 = vmatpush.msrb.mxu1 %v1579_v29 }
 0x151   :  { %735 = vmatpush.msrb.mxu0 %v1532_v11  ;;  %764 = vmatpush.msrb.mxu1 %v1534_v12 }
 0x153   :  { %938 = vmatpush.msra.mxu0 %v1423_v23  ;;  %1191 = vmatmul.msk.f32.vlgmr.msra.gmra.mxu2 %vm101_vm0, %v1532_v11 }
 0x154   :  { %1195 = vmatmul.msk.f32.vlgmr.msra.gmra.mxu3 %vm101_vm0, %v1534_v12  ;;  %967 = vmatpush.msra.mxu1 %v1425_v24 }
 0x155   :  { %1199 = vmatmul.msk.f32.vlgmr.msrb.gmra.mxu0 %vm101_vm0, %v1532_v11  ;;  %1203 = vmatmul.msk.f32.vlgmr.msrb.gmra.mxu1 %vm101_vm0, %v1534_v12 }
 0x156   :  { %939 = vmatpush.msra.mxu0 %v1415_v21  ;;  %968 = vmatpush.msra.mxu1 %v1417_v22 }
 0x158   :  { %940 = vmatpush.msra.mxu0 %v1407_v19  ;;  %969 = vmatpush.msra.mxu1 %v1409_v20  ;;  %v1690_v19 = vstv %s1142_s12  ;;  %v1692_v20 = vstv %s1143_s13 }
 0x15a   :  { %941 = vmatpush.msra.mxu0 %v1399_v17  ;;  %970 = vmatpush.msra.mxu1 %v1401_v18 }
 0x15b   :  { %1192 = vmatmul.msk.f32.gmra.mxu2 %vm101_vm0, %v1577_v58 }
 0x15c   :  { %1196 = vmatmul.msk.f32.gmra.mxu3 %vm101_vm0, %v1579_v29 }
 0x15d   :  { %1200 = vmatmul.msk.f32.gmra.mxu0 %vm101_vm0, %v1577_v58  ;;  %1204 = vmatmul.msk.f32.gmra.mxu1 %vm101_vm0, %v1579_v29 }
 0x163   :  { %1193 = vmatmul.msk.f32.gmra.mxu2 %vm101_vm0, %v355_v28 }
 0x164   :  { %1197 = vmatmul.msk.f32.gmra.mxu3 %vm101_vm0, %v384_v51 }
 0x165   :  { %1201 = vmatmul.msk.f32.gmra.mxu0 %vm101_vm0, %v355_v28  ;;  %1205 = vmatmul.msk.f32.gmra.mxu1 %vm101_vm0, %v384_v51 }
 0x16b   :  { %1194 = vmatmul.msk.f32.gmra.mxu2 %vm101_vm0, %v1636_v27 }
 0x16c   :  { %1198 = vmatmul.msk.f32.gmra.mxu3 %vm101_vm0, %v1638_v32 }
 0x16d   :  { %1202 = vmatmul.msk.f32.gmra.mxu0 %vm101_vm0, %v1636_v27  ;;  %1206 = vmatmul.msk.f32.gmra.mxu1 %vm101_vm0, %v1638_v32 }
 0x1b0   :  { %v555_v17 = vpop.f32.mrf.mxu0  ;;  %v584_v18 = vpop.f32.mrf.mxu1 }
 0x1b1   :  { %v596_v58 = vmul.f32 0.0013888889, %v555_v17  ;;  %v613_v29 = vmul.f32 %v1692_v20, %v555_v17  ;;  %v600_v3 = vmul.f32 0.0013888889, %v584_v18  ;;  %v617_v26 = vmul.f32 %v1692_v20, %v584_v18 }
 0x1b5   :  { %v452_v21 = vpop.f32.mrf.mxu2  ;;  %v493_v12 = vpop.f32.mrf.mxu3 }
 0x1b6   :  { %v505_v22 = vmul.f32 0.008333334, %v452_v21  ;;  %v522_v11 = vmul.f32 %v1690_v19, %v452_v21  ;;  %v509_v34 = vmul.f32 0.008333334, %v493_v12  ;;  %v526_v57 = vmul.f32 %v1690_v19, %v493_v12 }
 0x1b8   :  { %v513_v59 = vadd.f32 %v505_v22, %v1558_v49  ;;  %v530_v25 = vadd.f32 %v522_v11, %v1560_v52  ;;  %v517_v5 = vadd.f32 %v509_v34, %v1562_v53  ;;  %v534_v6 = vadd.f32 %v526_v57, %v1564_v54 }
 0x1b9   :  { %v558_v2 = vpop.f32.mrf.mxu0  ;;  %v587_v38 = vpop.f32.mrf.mxu1 }
 0x1ba   :  { %v1702_v45 = vadd.f32 %v596_v58, %v513_v59  ;;  %v1704_v46 = vadd.f32 %v613_v29, %v530_v25  ;;  %v1706_v47 = vadd.f32 %v600_v3, %v517_v5  ;;  %v1708_v33 = vadd.f32 %v617_v26, %v534_v6 }
 0x1bb   :  { %v597_v53 = vmul.f32 0.0013888889, %v558_v2  ;;  %v614_v54 = vmul.f32 %v1692_v20, %v558_v2  ;;  %v601_v28 = vmul.f32 0.0013888889, %v587_v38  ;;  %v618_v51 = vmul.f32 %v1692_v20, %v587_v38 }
 0x1be   :  { %v455_v49 = vpop.f32.mrf.mxu2  ;;  %v496_v55 = vpop.f32.mrf.mxu3 }
 0x1bf   :  { %v506_v48 = vmul.f32 0.008333334, %v455_v49  ;;  %v523_v52 = vmul.f32 %v1690_v19, %v455_v49  ;;  %v510_v56 = vmul.f32 0.008333334, %v496_v55  ;;  %v527_v62 = vmul.f32 %v1690_v19, %v496_v55 }
 0x1c1   :  { %v514_v63 = vadd.f32 %v506_v48, %v1603_v40  ;;  %v531_v36 = vadd.f32 %v523_v52, %v1605_v41  ;;  %v561_v50 = vpop.f32.mrf.mxu0  ;;  %v518_v9 = vadd.f32 %v510_v56, %v1607_v42  ;;  %v535_v10 = vadd.f32 %v527_v62, %v1609_v43  ;;  %v590_v37 = vpop.f32.mrf.mxu1 }
 0x1c2   :  { %v598_v42 = vmul.f32 0.0013888889, %v561_v50  ;;  %v615_v43 = vmul.f32 %v1692_v20, %v561_v50  ;;  %v602_v59 = vmul.f32 0.0013888889, %v590_v37  ;;  %v619_v25 = vmul.f32 %v1692_v20, %v590_v37 }
 0x1c3   :  { %v1718_v13 = vadd.f32 %v597_v53, %v514_v63  ;;  %v1720_v17 = vadd.f32 %v614_v54, %v531_v36  ;;  %v1722_v18 = vadd.f32 %v601_v28, %v518_v9  ;;  %v1724_v21 = vadd.f32 %v618_v51, %v535_v10 }
 0x1c4   :  { %v1756_v52 = vstv %s1145_s15 }
 0x1c6   :  { %v458_v40 = vpop.f32.mrf.mxu2  ;;  %v499_v11 = vpop.f32.mrf.mxu3 }
 0x1c7   :  { %v507_v22 = vmul.f32 0.008333334, %v458_v40  ;;  %v524_v41 = vmul.f32 %v1690_v19, %v458_v40  ;;  %v511_v12 = vmul.f32 0.008333334, %v499_v11  ;;  %v528_v34 = vmul.f32 %v1690_v19, %v499_v11 }
 0x1c9   :  { %v515_v57 = vadd.f32 %v507_v22, %v1628_v14  ;;  %v532_v58 = vadd.f32 %v524_v41, %v1630_v0  ;;  %v1731_v29 = vpop.f32.mrf.mxu0  ;;  %v519_v2 = vadd.f32 %v511_v12, %v1632_v15  ;;  %v536_v3 = vadd.f32 %v528_v34, %v1634_v16  ;;  %v1736_v26 = vpop.f32.mrf.mxu1 }
 0x1ca   :  { %v1754_v16 = vstv %s1144_s14 }
 0x1cb   :  { %v1738_v5 = vadd.f32 %v598_v42, %v515_v57  ;;  %v1740_v6 = vadd.f32 %v615_v43, %v532_v58  ;;  %v1742_v38 = vadd.f32 %v602_v59, %v519_v2  ;;  %v1744_v14 = vadd.f32 %v619_v25, %v536_v3 }
 0x1ce   :  { %v1746_v0 = vpop.f32.mrf.mxu2  ;;  %v1748_v49 = vpop.f32.mrf.mxu3 }
 0x1d2   :  { %v737_v48 = vpop.f32.mrf.mxu0  ;;  %v766_v15 = vpop.f32.mrf.mxu1 }
 0x1d3   :  { %1207 = vmatmul.msk.f32.vlgmr.msrb.gmra.mxu2 %vm101_vm0, %v737_v48  ;;  %1215 = vmatmul.msk.f32.vlgmr.msra.gmra.mxu0 %vm101_vm0, %v737_v48  ;;  %v778_v36 = vmul.f32 2.4801588e-05, %v737_v48  ;;  %v795_v50 = vmul.f32 %v1756_v52, %v737_v48  ;;  %v782_v9 = vmul.f32 2.4801588e-05, %v766_v15  ;;  %v799_v10 = vmul.f32 %v1756_v52, %v766_v15 }
 0x1d4   :  { %1211 = vmatmul.msk.f32.vlgmr.msrb.gmra.mxu3 %vm101_vm0, %v766_v15  ;;  %1219 = vmatmul.msk.f32.vlgmr.msra.gmra.mxu1 %vm101_vm0, %v766_v15 }
 0x1d6   :  { %v646_v55 = vpop.f32.mrf.mxu2 }
 0x1d7   :  { %v687_v56 = vmul.f32 0.0001984127, %v646_v55  ;;  %v704_v62 = vmul.f32 %v1754_v16, %v646_v55  ;;  %v675_v53 = vpop.f32.mrf.mxu3 }
 0x1d8   :  { %v691_v54 = vmul.f32 0.0001984127, %v675_v53  ;;  %v708_v63 = vmul.f32 %v1754_v16, %v675_v53 }
 0x1d9   :  { %v695_v28 = vadd.f32 %v687_v56, %v1702_v45  ;;  %v712_v51 = vadd.f32 %v704_v62, %v1704_v46 }
 0x1da   :  { %v699_v37 = vadd.f32 %v691_v54, %v1706_v47  ;;  %v716_v40 = vadd.f32 %v708_v63, %v1708_v33  ;;  %v740_v22 = vpop.f32.mrf.mxu0  ;;  %v769_v41 = vpop.f32.mrf.mxu1 }
 0x1db   :  { %1208 = vmatmul.msk.f32.gmra.mxu2 %vm101_vm0, %v740_v22  ;;  %1216 = vmatmul.msk.f32.gmra.mxu0 %vm101_vm0, %v740_v22  ;;  %v1768_v11 = vadd.f32 %v778_v36, %v695_v28  ;;  %v1770_v12 = vadd.f32 %v795_v50, %v712_v51  ;;  %v779_v58 = vmul.f32 2.4801588e-05, %v740_v22  ;;  %v796_v59 = vmul.f32 %v1756_v52, %v740_v22 }
 0x1dc   :  { %1212 = vmatmul.msk.f32.gmra.mxu3 %vm101_vm0, %v769_v41  ;;  %1220 = vmatmul.msk.f32.gmra.mxu1 %vm101_vm0, %v769_v41  ;;  %v1774_v45 = vadd.f32 %v782_v9, %v699_v37  ;;  %v1776_v46 = vadd.f32 %v799_v10, %v716_v40  ;;  %v783_v3 = vmul.f32 2.4801588e-05, %v769_v41  ;;  %v800_v48 = vmul.f32 %v1756_v52, %v769_v41 }
 0x1de   :  { %v649_v47 = vpop.f32.mrf.mxu2 }
 0x1df   :  { %v688_v33 = vmul.f32 0.0001984127, %v649_v47  ;;  %v705_v34 = vmul.f32 %v1754_v16, %v649_v47  ;;  %v678_v42 = vpop.f32.mrf.mxu3 }
 0x1e0   :  { %v692_v43 = vmul.f32 0.0001984127, %v678_v42  ;;  %v709_v57 = vmul.f32 %v1754_v16, %v678_v42  ;;  %v1829_v42 = vld [vmem:[%s2020_s2 + $0x18] sm:$0xff] }
 0x1e1   :  { %v696_v25 = vadd.f32 %v688_v33, %v1718_v13  ;;  %v713_v2 = vadd.f32 %v705_v34, %v1720_v17  ;;  %2026 = vst [vmem:[#allocation8_spill] sm:$0xff] %v1829_v42  ;;  %1032 = vmatpush.msra.mxu2 %v1829_v42 }
 0x1e2   :  { %v700_v15 = vadd.f32 %v692_v43, %v1722_v18  ;;  %v717_v55 = vadd.f32 %v709_v57, %v1724_v21  ;;  %v743_v56 = vpop.f32.mrf.mxu0  ;;  %v772_v62 = vpop.f32.mrf.mxu1  ;;  %v1834_v43 = vld [vmem:[%s2020_s2 + $0x38] sm:$0xff]  ;;  %v1841_v57 = vld [vmem:[%s2020_s2 + $0x10] sm:$0xff] }
 0x1e3   :  { %1209 = vmatmul.msk.f32.gmra.mxu2 %vm101_vm0, %v743_v56  ;;  %1217 = vmatmul.msk.f32.gmra.mxu0 %vm101_vm0, %v743_v56  ;;  %v1788_v53 = vadd.f32 %v779_v58, %v696_v25  ;;  %v1790_v54 = vadd.f32 %v796_v59, %v713_v2  ;;  %v780_v51 = vmul.f32 2.4801588e-05, %v743_v56  ;;  %v797_v9 = vmul.f32 %v1756_v52, %v743_v56  ;;  %v1846_v58 = vld [vmem:[%s2020_s2 + $0x30] sm:$0xff]  ;;  %v1853_v59 = vld [vmem:[%s2020_s2 + $0x8] sm:$0xff]  ;;  %v1865_v2 = vld [vmem:[%s2020_s2] sm:$0xff] }
 0x1e4   :  { %1213 = vmatmul.msk.f32.gmra.mxu3 %vm101_vm0, %v772_v62  ;;  %1221 = vmatmul.msk.f32.gmra.mxu1 %vm101_vm0, %v772_v62  ;;  %v1794_v13 = vadd.f32 %v783_v3, %v700_v15  ;;  %v1796_v17 = vadd.f32 %v800_v48, %v717_v55  ;;  %v784_v40 = vmul.f32 2.4801588e-05, %v772_v62  ;;  %v801_v22 = vmul.f32 %v1756_v52, %v772_v62  ;;  %v1858_v25 = vld [vmem:[%s2020_s2 + $0x28] sm:$0xff]  ;;  %v1870_v3 = vld [vmem:[%s2020_s2 + $0x20] sm:$0xff]  ;;  %s1278_s2 = smov [#allocation5]  }
 0x1e5   :  { %2027 = vst [vmem:[#allocation9_spill] sm:$0xff] %v1834_v43  ;;  %1073 = vmatpush.msra.mxu3 %v1834_v43  ;;  %1033 = vmatpush.msra.mxu2 %v1841_v57  ;;  %v60_v48 = vadd.s32 24, %v1471_v30  ;;  %v2028_v56 = vmov 0.0   ;;  %v204_v30 = vmul.f32 %v1487_v39, %v1423_v23  ;;  %v393_v43 = vmul.f32 0.041666668, %v1636_v27  ;;  %s1119_s6 = sshll.u32 %s1278_s2, 4  ;;  %s1120_s6 = int_to_ptr.vmem [resolvable:$true] %s1119_s6 }
 0x1e6   :  { %v652_v18 = vpop.f32.mrf.mxu2 }
 0x1e7   :  { %v689_v21 = vmul.f32 0.0001984127, %v652_v18  ;;  %v706_v63 = vmul.f32 %v1754_v16, %v652_v18  ;;  %v681_v36 = vpop.f32.mrf.mxu3  ;;  %1074 = vmatpush.msra.mxu3 %v1846_v58  ;;  %1034 = vmatpush.msra.mxu2 %v1853_v59  ;;  %vm66_vm4 = vcmp.eq.s32.totalorder %v60_v48, %v1473_v31  ;;  %v319_v48 = vmul.f32 %v1494_v44, %v1518_v60 }
 0x1e8   :  { %v693_v50 = vmul.f32 0.0001984127, %v681_v36  ;;  %v710_v28 = vmul.f32 %v1754_v16, %v681_v36  ;;  %v1150_v62 = vsel %vm66_vm4, 1.0, %v2028_v56  ;;  %v96_v36 = vmul.f32 %v1479_v35, %v1330_v7 }
 0x1e9   :  { %v697_v10 = vadd.f32 %v689_v21, %v1738_v5  ;;  %v714_v37 = vadd.f32 %v706_v63, %v1740_v6  ;;  %1075 = vmatpush.msra.mxu3 %v1858_v25  ;;  %1035 = vmatpush.msra.mxu2 %v1865_v2  ;;  %v87_v63 = vadd.f32 %v1150_v62, %v1330_v7 }
 0x1ea   :  { %v701_v41 = vadd.f32 %v693_v50, %v1742_v38  ;;  %v718_v47 = vadd.f32 %v710_v28, %v1744_v14  ;;  %v1806_v33 = vpop.f32.mrf.mxu0  ;;  %v1808_v34 = vpop.f32.mrf.mxu1  ;;  %v187_v50 = vmul.f32 0.5, %v1423_v23  ;;  %v1887_v28 = vstv %s1146_s5 }
 0x1eb   :  { %1210 = vmatmul.msk.f32.gmra.mxu2 %vm101_vm0, %v1806_v33  ;;  %1218 = vmatmul.msk.f32.gmra.mxu0 %vm101_vm0, %v1806_v33  ;;  %v1814_v5 = vadd.f32 %v780_v51, %v697_v10  ;;  %v1816_v6 = vadd.f32 %v797_v9, %v714_v37  ;;  %v91_v31 = vadd.f32 %v1150_v62, %v1333_v8  ;;  %v191_v9 = vmul.f32 0.5, %v1425_v24 }
 0x1ec   :  { %1214 = vmatmul.msk.f32.gmra.mxu3 %vm101_vm0, %v1808_v34  ;;  %1222 = vmatmul.msk.f32.gmra.mxu1 %vm101_vm0, %v1808_v34  ;;  %v1822_v38 = vadd.f32 %v784_v40, %v701_v41  ;;  %v1824_v14 = vadd.f32 %v801_v22, %v718_v47  ;;  %v100_v51 = vmul.f32 %v1479_v35, %v1333_v8  ;;  %v302_v23 = vmul.f32 0.16666667, %v1518_v60 }
 0x1ed   :  { %1076 = vmatpush.msra.mxu3 %v1870_v3  ;;  %v208_v10 = vmul.f32 %v1487_v39, %v1425_v24  ;;  %v195_v40 = vadd.f32 %v187_v50, %v87_v63  ;;  %v212_v7 = vadd.f32 %v204_v30, %v96_v36  ;;  %v306_v35 = vmul.f32 0.16666667, %v1520_v61 }
 0x1ee   :  { %v1876_v15 = vpop.f32.mrf.mxu2  ;;  %v323_v63 = vmul.f32 %v1494_v44, %v1520_v61  ;;  %v199_v60 = vadd.f32 %v191_v9, %v91_v31  ;;  %v525_v31 = vmul.f32 %v1690_v19, %v1746_v0  ;;  %v414_v9 = vmul.f32 %v1524_v1, %v1638_v32 }
 0x1ef   :  { %v1878_v55 = vpop.f32.mrf.mxu3  ;;  %v310_v44 = vadd.f32 %v302_v23, %v195_v40  ;;  %v327_v61 = vadd.f32 %v319_v48, %v212_v7  ;;  %v512_v23 = vmul.f32 0.008333334, %v1748_v49  ;;  %v529_v48 = vmul.f32 %v1690_v19, %v1748_v49 }
 0x1f0   :  { %v599_v19 = vmul.f32 0.0013888889, %v1731_v29  ;;  %v616_v49 = vmul.f32 %v1692_v20, %v1731_v29 }
 0x250   :  { %v943_v18 = vpop.f32.mrf.mxu0 }
 0x251   :  { %v972_v21 = vpop.f32.mrf.mxu1  ;;  %v984_v62 = vmul.f32 2.755732e-07, %v943_v18 }
 0x252   :  { %v988_v36 = vmul.f32 2.755732e-07, %v972_v21 }
 0x256   :  { %v840_v37 = vpop.f32.mrf.mxu2 }
 0x257   :  { %v893_v22 = vmul.f32 2.7557319e-06, %v840_v37  ;;  %v910_v41 = vmul.f32 %v1887_v28, %v840_v37  ;;  %v881_v47 = vpop.f32.mrf.mxu3 }
 0x258   :  { %v897_v56 = vmul.f32 2.7557319e-06, %v881_v47  ;;  %v914_v8 = vmul.f32 %v1887_v28, %v881_v47  ;;  %v946_v37 = vpop.f32.mrf.mxu0  ;;  %v410_v47 = vmul.f32 %v1524_v1, %v1636_v27  ;;  %v397_v27 = vmul.f32 0.041666668, %v1638_v32 }
 0x259   :  { %v901_v24 = vadd.f32 %v893_v22, %v1768_v11  ;;  %v918_v39 = vadd.f32 %v910_v41, %v1770_v12  ;;  %v975_v42 = vpop.f32.mrf.mxu1  ;;  %v216_v11 = vadd.f32 %v208_v10, %v100_v51  ;;  %v401_v10 = vadd.f32 %v393_v43, %v310_v44 }
 0x25a   :  { %v905_v50 = vadd.f32 %v897_v56, %v1774_v45  ;;  %v922_v30 = vadd.f32 %v914_v8, %v1776_v46  ;;  %v314_v45 = vadd.f32 %v306_v35, %v199_v60  ;;  %v508_v46 = vmul.f32 0.008333334, %v1746_v0 }
 0x25b   :  { %v992_v18 = vadd.f32 %v984_v62, %v901_v24  ;;  %1223 = vmatmul.msk.f32.vlgmr.msra.gmra.mxu2 %vm101_vm0, %v918_v39  ;;  %v331_v21 = vadd.f32 %v323_v63, %v216_v11  ;;  %v418_v40 = vadd.f32 %v410_v47, %v327_v61  ;;  %v985_v35 = vmul.f32 2.755732e-07, %v946_v37 }
 0x25c   :  { %v996_v12 = vadd.f32 %v988_v36, %v905_v50  ;;  %1227 = vmatmul.msk.f32.vlgmr.msra.gmra.mxu3 %vm101_vm0, %v922_v30  ;;  %v516_v8 = vadd.f32 %v508_v46, %v401_v10  ;;  %v989_v62 = vmul.f32 2.755732e-07, %v975_v42  ;;  %v405_v63 = vadd.f32 %v397_v27, %v314_v45 }
 0x25d   :  { %1098 = vst.msk [vmem:[#allocation5] sm:$0xff] %vm101_vm0, %v992_v18  ;;  %v533_v43 = vadd.f32 %v525_v31, %v418_v40  ;;  %v422_v50 = vadd.f32 %v414_v9, %v331_v21  ;;  %v690_v18 = vmul.f32 0.0001984127, %v1876_v15  ;;  %v707_v11 = vmul.f32 %v1754_v16, %v1876_v15 }
 0x25e   :  { %1102 = vst.msk [vmem:[#allocation5 + $0x20] sm:$0xff] %vm101_vm0, %v996_v12  ;;  %v843_v51 = vpop.f32.mrf.mxu2  ;;  %v520_v42 = vadd.f32 %v512_v23, %v405_v63  ;;  %v607_v60 = vadd.f32 %v599_v19, %v516_v8  ;;  %v694_v45 = vmul.f32 0.0001984127, %v1878_v55 }
 0x25f   :  { %v894_v7 = vmul.f32 2.7557319e-06, %v843_v51  ;;  %v911_v22 = vmul.f32 %v1887_v28, %v843_v51  ;;  %v884_v41 = vpop.f32.mrf.mxu3  ;;  %v537_v37 = vadd.f32 %v529_v48, %v422_v50  ;;  %v624_v47 = vadd.f32 %v616_v49, %v533_v43 }
 0x260   :  { %v898_v0 = vmul.f32 2.7557319e-06, %v884_v41  ;;  %v915_v56 = vmul.f32 %v1887_v28, %v884_v41 }
 0x261   :  { %v902_v1 = vadd.f32 %v894_v7, %v1788_v53  ;;  %v919_v32 = vadd.f32 %v911_v22, %v1790_v54  ;;  %v949_v53 = vpop.f32.mrf.mxu0  ;;  %v603_v54 = vmul.f32 0.0013888889, %v1736_v26  ;;  %v698_v7 = vadd.f32 %v690_v18, %v607_v60 }
 0x262   :  { %v906_v24 = vadd.f32 %v898_v0, %v1794_v13  ;;  %v923_v39 = vadd.f32 %v915_v56, %v1796_v17  ;;  %v978_v13 = vpop.f32.mrf.mxu1  ;;  %v620_v17 = vmul.f32 %v1692_v20, %v1736_v26  ;;  %v711_v20 = vmul.f32 %v1754_v16, %v1878_v55 }
 0x263   :  { %v993_v36 = vadd.f32 %v985_v35, %v902_v1  ;;  %1224 = vmatmul.msk.f32.gmra.mxu2 %vm101_vm0, %v919_v32  ;;  %v611_v21 = vadd.f32 %v603_v54, %v520_v42  ;;  %v986_v31 = vmul.f32 2.755732e-07, %v949_v53  ;;  %v990_v15 = vmul.f32 2.755732e-07, %v978_v13 }
 0x264   :  { %v997_v30 = vadd.f32 %v989_v62, %v906_v24  ;;  %1228 = vmatmul.msk.f32.gmra.mxu3 %vm101_vm0, %v923_v39  ;;  %v628_v51 = vadd.f32 %v620_v17, %v537_v37  ;;  %v715_v22 = vadd.f32 %v707_v11, %v624_v47  ;;  %v1004_v53 = vmul.f32 %v1321_v4, %v1870_v3 }
 0x265   :  { %1099 = vst.msk [vmem:[#allocation5 + $0x8] sm:$0xff] %vm101_vm0, %v993_v36  ;;  %v702_v16 = vadd.f32 %v694_v45, %v611_v21  ;;  %v1005_v3 = vmul.f32 %v1321_v4, %v1858_v25  ;;  %v1006_v25 = vmul.f32 %v1321_v4, %v1846_v58  ;;  %v2030_v45 = vld [vmem:[#allocation9_spill] sm:$0xff] }
 0x266   :  { %1103 = vst.msk [vmem:[#allocation5 + $0x28] sm:$0xff] %vm101_vm0, %v997_v30  ;;  %v846_v29 = vpop.f32.mrf.mxu2  ;;  %v719_v55 = vadd.f32 %v711_v20, %v628_v51  ;;  %v1007_v58 = vmul.f32 %v1321_v4, %v2030_v45 }
 0x267   :  { %v895_v12 = vmul.f32 2.7557319e-06, %v846_v29  ;;  %v912_v44 = vmul.f32 %v1887_v28, %v846_v29  ;;  %v887_v61 = vpop.f32.mrf.mxu3 }
 0x268   :  { %v899_v26 = vmul.f32 2.7557319e-06, %v887_v61  ;;  %v916_v46 = vmul.f32 %v1887_v28, %v887_v61  ;;  %v2029_v61 = vld [vmem:[#allocation8_spill] sm:$0xff] }
 0x269   :  { %v903_v27 = vadd.f32 %v895_v12, %v1814_v5  ;;  %v920_v9 = vadd.f32 %v912_v44, %v1816_v6  ;;  %v781_v5 = vmul.f32 2.4801588e-05, %v1806_v33  ;;  %v798_v6 = vmul.f32 %v1756_v52, %v1806_v33  ;;  %v952_v48 = vpop.f32.mrf.mxu0 }
 0x26a   :  { %v907_v10 = vadd.f32 %v899_v26, %v1822_v38  ;;  %v924_v40 = vadd.f32 %v916_v46, %v1824_v14  ;;  %v785_v38 = vmul.f32 2.4801588e-05, %v1808_v34  ;;  %v802_v14 = vmul.f32 %v1756_v52, %v1808_v34  ;;  %v981_v56 = vpop.f32.mrf.mxu1 }
 0x26b   :  { %v994_v41 = vadd.f32 %v986_v31, %v903_v27  ;;  %1225 = vmatmul.msk.f32.gmra.mxu2 %vm101_vm0, %v920_v9  ;;  %v789_v8 = vadd.f32 %v781_v5, %v698_v7  ;;  %v806_v35 = vadd.f32 %v798_v6, %v715_v22  ;;  %v987_v63 = vmul.f32 2.755732e-07, %v952_v48 }
 0x26c   :  { %v998_v23 = vadd.f32 %v990_v15, %v907_v10  ;;  %1229 = vmatmul.msk.f32.gmra.mxu3 %vm101_vm0, %v924_v40  ;;  %v793_v62 = vadd.f32 %v785_v38, %v702_v16  ;;  %v810_v33 = vadd.f32 %v802_v14, %v719_v55  ;;  %v991_v52 = vmul.f32 2.755732e-07, %v981_v56 }
 0x26d   :  { %1100 = vst.msk [vmem:[#allocation5 + $0x10] sm:$0xff] %vm101_vm0, %v994_v41 }
 0x26e   :  { %1104 = vst.msk [vmem:[#allocation5 + $0x30] sm:$0xff] %vm101_vm0, %v998_v23  ;;  %v849_v0 = vpop.f32.mrf.mxu2 }
 0x26f   :  { %v896_v1 = vmul.f32 2.7557319e-06, %v849_v0  ;;  %v913_v32 = vmul.f32 %v1887_v28, %v849_v0  ;;  %v890_v43 = vpop.f32.mrf.mxu3 }
 0x270   :  { %v900_v24 = vmul.f32 2.7557319e-06, %v890_v43  ;;  %v917_v39 = vmul.f32 %v1887_v28, %v890_v43  ;;  %v1000_v28 = vmul.f32 %v1321_v4, %v1865_v2  ;;  %v1001_v2 = vmul.f32 %v1321_v4, %v1853_v59 }
 0x271   :  { %v904_v36 = vadd.f32 %v896_v1, %v789_v8  ;;  %v921_v19 = vadd.f32 %v913_v32, %v806_v35  ;;  %v1002_v59 = vmul.f32 %v1321_v4, %v1841_v57  ;;  %v1003_v57 = vmul.f32 %v1321_v4, %v2029_v61 }
 0x272   :  { %v908_v34 = vadd.f32 %v900_v24, %v793_v62  ;;  %v925_v49 = vadd.f32 %v917_v39, %v810_v33 }
 0x273   :  { %v995_v50 = vadd.f32 %v987_v63, %v904_v36  ;;  %1226 = vmatmul.msk.f32.gmra.mxu2 %vm101_vm0, %v921_v19 }
 0x274   :  { %v999_v30 = vadd.f32 %v991_v52, %v908_v34  ;;  %1230 = vmatmul.msk.f32.gmra.mxu3 %vm101_vm0, %v925_v49 }
 0x275   :  { %1101 = vst.msk [vmem:[#allocation5 + $0x18] sm:$0xff] %vm101_vm0, %v995_v50 }
 0x276   :  { %1105 = vst.msk [vmem:[#allocation5 + $0x38] sm:$0xff] %vm101_vm0, %v999_v30 }
 0x277   :  { %1127 = dma.vmem_to_hbm [thread:$0]  %s1120_s6, 1024, %s1122_s1, [#allocation3], %s1279_s9, %s1279_s9, %s1280_s10  }
 0x2de   :  { %v1037_v54 = vpop.f32.mrf.mxu2 }
 0x2df   :  { %v1090_v42 = vadd.f32 %v1037_v54, %v1000_v28  ;;  %v1078_v13 = vpop.f32.mrf.mxu3 }
 0x2e0   :  { %v1094_v17 = vadd.f32 %v1078_v13, %v1004_v53 }
 0x2e1   :  { %1107 = vst.msk [vmem:[%s2022_s4] sm:$0xff] %vm1106_vm5, %v1090_v42 }
 0x2e2   :  { %1111 = vst.msk [vmem:[%s2022_s4 + $0x20] sm:$0xff] %vm1106_vm5, %v1094_v17 }
 0x2e6   :  { %v1040_v37 = vpop.f32.mrf.mxu2 }
 0x2e7   :  { %v1091_v60 = vadd.f32 %v1040_v37, %v1001_v2  ;;  %v1081_v47 = vpop.f32.mrf.mxu3 }
 0x2e8   :  { %v1095_v29 = vadd.f32 %v1081_v47, %v1005_v3 }
 0x2e9   :  { %1108 = vst.msk [vmem:[%s2022_s4 + $0x8] sm:$0xff] %vm1106_vm5, %v1091_v60 }
 0x2ea   :  { %1112 = vst.msk [vmem:[%s2022_s4 + $0x28] sm:$0xff] %vm1106_vm5, %v1095_v29 }
 0x2ee   :  { %v1043_v18 = vpop.f32.mrf.mxu2 }
 0x2ef   :  { %v1092_v11 = vadd.f32 %v1043_v18, %v1002_v59  ;;  %v1084_v12 = vpop.f32.mrf.mxu3 }
 0x2f0   :  { %v1096_v44 = vadd.f32 %v1084_v12, %v1006_v25 }
 0x2f1   :  { %1109 = vst.msk [vmem:[%s2022_s4 + $0x10] sm:$0xff] %vm1106_vm5, %v1092_v11 }
 0x2f2   :  { %1113 = vst.msk [vmem:[%s2022_s4 + $0x30] sm:$0xff] %vm1106_vm5, %v1096_v44 }
 0x2f6   :  { %v1046_v20 = vpop.f32.mrf.mxu2 }
 0x2f7   :  { %v1093_v26 = vadd.f32 %v1046_v20, %v1003_v57  ;;  %v1087_v46 = vpop.f32.mrf.mxu3 }
 0x2f8   :  { %v1097_v21 = vadd.f32 %v1087_v46, %v1007_v58 }
 0x2f9   :  { %1110 = vst.msk [vmem:[%s2022_s4 + $0x18] sm:$0xff] %vm1106_vm5, %v1093_v26 }
 0x2fa   :  { %1114 = vst.msk [vmem:[%s2022_s4 + $0x38] sm:$0xff] %vm1106_vm5, %v1097_v21 }
 0x2fb   :  { %1274 = dma.done.wait [#allocation3], 1024  }
 0x2fc   :  { %1275 = vsyncadd [#allocation3], 4294966272 }
 0x2fd   :  { %1136 = vsyncpa [#allocation3], 1 }
 0x2fe   :  { %1137 = vsyncpa [#allocation4], 1 }

</bundles_post_ra>
